<compile_context>
chip_gen: v7x
topology: tpu7x:2x2x1
jax: 0.10.0
libtpu: 0.0.40
codegen_flags: <defaults>
</compile_context>

<pallas_src>
import functools
import math

import jax
import jax.numpy as jnp
from jax.experimental import pallas as pl
from jax.experimental.pallas import tpu as pltpu

EPS = 1e-6  # LayerNormization eps


# ------------------------------ in-kernel math -------------------------------

def _layer_norm_math(x, alpha, beta):
    # x: (rows, d_model); alpha/beta scalars.  torch.std -> unbiased (n-1).
    n = x.shape[-1]
    mean = jnp.mean(x, axis=-1, keepdims=True)
    var = jnp.sum((x - mean) ** 2, axis=-1, keepdims=True) / (n - 1)
    std = jnp.sqrt(var)
    return alpha * (x - mean) / (std + EPS) + beta


# ------------------------------ Pallas kernels -------------------------------

def _attention_block_kernel(alpha_ref, beta_ref, xq_ref, xkv_ref,
                            wq_ref, bq_ref, wk_ref, bk_ref, wv_ref, bv_ref,
                            wo_ref, bo_ref, o_ref, *, num_heads, self_attention):
    """One residual attention branch for one batch element, fully fused:
       out = x + Wo(softmax(Q K^T / sqrt(dk)) V) with Q from LN(x)."""
    xq = xq_ref[0]                                      # (Sq, D) f32
    Sq, D = xq.shape
    H = num_heads
    dk = D // H

    q_src = _layer_norm_math(xq, alpha_ref[0, 0], beta_ref[0, 0])
    kv_src = q_src if self_attention else xkv_ref[0]    # cross-attn: raw encoder out
    Sk = kv_src.shape[0]

    # Head-batched projections: broadcast activations over the leading head dim
    # and use canonical batched matmuls (no reshapes / transposes in-kernel).
    qb = jnp.broadcast_to(q_src, (H, Sq, D))
    kvb = jnp.broadcast_to(kv_src, (H, Sk, D))
    qh = jnp.einsum("hsd,hde->hse", qb, wq_ref[...],
                    preferred_element_type=jnp.float32) + bq_ref[...]   # (H,Sq,dk)
    kh = jnp.einsum("hsd,hde->hse", kvb, wk_ref[...],
                    preferred_element_type=jnp.float32) + bk_ref[...]   # (H,Sk,dk)
    vh = jnp.einsum("hsd,hde->hse", kvb, wv_ref[...],
                    preferred_element_type=jnp.float32) + bv_ref[...]   # (H,Sk,dk)

    # Fold 1/sqrt(d_k) into q before the score matmul.
    qh = qh * (1.0 / math.sqrt(dk))

    # Scores contract on the shared last axis (no k.T -> no XLU transpose).
    s = jnp.einsum("hqd,hkd->hqk", qh, kh, preferred_element_type=jnp.float32)
    # NOTE: masks intentionally NOT applied (reference masked_fill result discarded).
    s = s - jnp.max(s, axis=-1, keepdims=True)
    p = jnp.exp(s)
    p = p * pl.reciprocal(jnp.sum(p, axis=-1, keepdims=True), approx=True)

    attn = jnp.einsum("hqk,hkd->hqd", p, vh, preferred_element_type=jnp.float32)

    # Output projection with head-major Wo (H, dk, D); summing per-head
    # contributions avoids transposing attn back to (Sq, H*dk).
    proj = jnp.einsum("hqd,hde->hqe", attn, wo_ref[...],
                      preferred_element_type=jnp.float32)               # (H,Sq,D)
    o_ref[0] = xq + jnp.sum(proj, axis=0) + bo_ref[...]                 # residual fused


def _ffn_block_kernel(alpha_ref, beta_ref, x_ref, w1_ref, b1_ref, w2_ref, b2_ref,
                      o_ref):
    """Residual FFN branch, fused: out = x + W2(relu(W1(LN(x))))."""
    x = x_ref[0]                                        # (S, D)
    ln = _layer_norm_math(x, alpha_ref[0, 0], beta_ref[0, 0])
    h1 = jnp.dot(ln, w1_ref[...], preferred_element_type=jnp.float32) + b1_ref[...]
    h1 = jnp.maximum(h1, 0.0)                           # intermediate stays on-chip
    y = jnp.dot(h1, w2_ref[...], preferred_element_type=jnp.float32) + b2_ref[...]
    o_ref[0] = x + y                                    # residual fused


def _layer_norm_kernel(alpha_ref, beta_ref, x_ref, o_ref):
    o_ref[0] = _layer_norm_math(x_ref[0], alpha_ref[0, 0], beta_ref[0, 0])


# ------------------------------ Pallas wrappers ------------------------------

def attention_block(x_q, x_kv, alpha, beta, p, num_heads, self_attention):
    B, Sq, D = x_q.shape
    Sk = x_kv.shape[1]
    dk = D // num_heads
    kernel = functools.partial(_attention_block_kernel,
                               num_heads=num_heads, self_attention=self_attention)
    w_map = lambda b: (0, 0, 0)
    return pl.pallas_call(
        kernel,
        out_shape=jax.ShapeDtypeStruct((B, Sq, D), jnp.float32),
        grid=(B,),
        in_specs=[
            pl.BlockSpec(memory_space=pltpu.MemorySpace.SMEM),     # alpha
            pl.BlockSpec(memory_space=pltpu.MemorySpace.SMEM),     # beta
            pl.BlockSpec((1, Sq, D), lambda b: (b, 0, 0)),         # x (query side)
            pl.BlockSpec((1, Sk, D), lambda b: (b, 0, 0)),         # x_kv (key/value side)
            pl.BlockSpec((num_heads, D, dk), w_map),               # Wq (head-major)
            pl.BlockSpec((num_heads, 1, dk), w_map),               # bq
            pl.BlockSpec((num_heads, D, dk), w_map),               # Wk
            pl.BlockSpec((num_heads, 1, dk), w_map),               # bk
            pl.BlockSpec((num_heads, D, dk), w_map),               # Wv
            pl.BlockSpec((num_heads, 1, dk), w_map),               # bv
            pl.BlockSpec((num_heads, dk, D), w_map),               # Wo (head-major)
            pl.BlockSpec((1, D), lambda b: (0, 0)),                # bo
        ],
        out_specs=pl.BlockSpec((1, Sq, D), lambda b: (b, 0, 0)),
        compiler_params=pltpu.CompilerParams(dimension_semantics=("parallel",)),
    )(alpha, beta, x_q, x_kv,
      p["wq"], p["bq"], p["wk"], p["bk"], p["wv"], p["bv"], p["wo"], p["bo"])


def ffn_block(x, alpha, beta, p):
    B, S, D = x.shape
    dff = p["w1"].shape[1]
    return pl.pallas_call(
        _ffn_block_kernel,
        out_shape=jax.ShapeDtypeStruct((B, S, D), jnp.float32),
        grid=(B,),
        in_specs=[
            pl.BlockSpec(memory_space=pltpu.MemorySpace.SMEM),     # alpha
            pl.BlockSpec(memory_space=pltpu.MemorySpace.SMEM),     # beta
            pl.BlockSpec((1, S, D), lambda b: (b, 0, 0)),
            pl.BlockSpec((D, dff), lambda b: (0, 0)),
            pl.BlockSpec((1, dff), lambda b: (0, 0)),
            pl.BlockSpec((dff, D), lambda b: (0, 0)),
            pl.BlockSpec((1, D), lambda b: (0, 0)),
        ],
        out_specs=pl.BlockSpec((1, S, D), lambda b: (b, 0, 0)),
        compiler_params=pltpu.CompilerParams(dimension_semantics=("parallel",)),
    )(alpha, beta, x, p["w1"], p["b1"], p["w2"], p["b2"])


def layer_norm(x, alpha, beta):
    B, S, D = x.shape
    return pl.pallas_call(
        _layer_norm_kernel,
        out_shape=jax.ShapeDtypeStruct((B, S, D), jnp.float32),
        grid=(B,),
        in_specs=[
            pl.BlockSpec(memory_space=pltpu.MemorySpace.SMEM),
            pl.BlockSpec(memory_space=pltpu.MemorySpace.SMEM),
            pl.BlockSpec((1, S, D), lambda b: (b, 0, 0)),
        ],
        out_specs=pl.BlockSpec((1, S, D), lambda b: (b, 0, 0)),
        compiler_params=pltpu.CompilerParams(dimension_semantics=("parallel",)),
    )(alpha, beta, x)


# ------------------------------ Module-level glue ----------------------------

def decoder_block(x, encoder_output, src_mask, tgt_mask, p, h):
    # ResidualConnection 0: self-attention (dropout = identity).
    x = attention_block(x, x, p["ln0_alpha"], p["ln0_beta"], p["self_attn"], h,
                        self_attention=True)
    # ResidualConnection 1: cross-attention (encoder output is NOT normalized).
    x = attention_block(x, encoder_output, p["ln1_alpha"], p["ln1_beta"],
                        p["cross_attn"], h, self_attention=False)
    # ResidualConnection 2: feed-forward.
    x = ffn_block(x, p["ln2_alpha"], p["ln2_beta"], p["ffn"])
    return x


def decoder(x, encoder_output, src_mask, tgt_mask, params, h):
    for layer_params in params["layers"]:
        x = decoder_block(x, encoder_output, src_mask, tgt_mask, layer_params, h)
    return layer_norm(x, params["norm_alpha"], params["norm_beta"])


# ------------------------------ Parameter init -------------------------------

def _init_linear(key, din, dout, scale=0.05):
    kw, kb = jax.random.split(key)
    w = jax.random.normal(kw, (din, dout), jnp.float32) * scale
    b = jax.random.normal(kb, (dout,), jnp.float32) * scale
    return w, b


def _init_mha(key, d_model, h):
    dk = d_model // h
    kq, kk, kv, ko = jax.random.split(key, 4)
    wq, bq = _init_linear(kq, d_model, d_model)
    wk, bk = _init_linear(kk, d_model, d_model)
    wv, bv = _init_linear(kv, d_model, d_model)
    wo, bo = _init_linear(ko, d_model, d_model)
    # Arrange weights head-major ONCE at init time (free at runtime):
    #   (D, D) -> (H, D, dk) for Q/K/V, and (D, D) -> (H, dk, D) for Wo.
    to_hw = lambda w: w.reshape(d_model, h, dk).transpose(1, 0, 2)
    to_hb = lambda b: b.reshape(h, 1, dk)
    return {
        "wq": to_hw(wq), "bq": to_hb(bq),
        "wk": to_hw(wk), "bk": to_hb(bk),
        "wv": to_hw(wv), "bv": to_hb(bv),
        "wo": wo.reshape(h, dk, d_model), "bo": bo.reshape(1, d_model),
    }


def _init_ffn(key, d_model, dff):
    k1, k2 = jax.random.split(key)
    w1, b1 = _init_linear(k1, d_model, dff)
    w2, b2 = _init_linear(k2, dff, d_model)
    return {"w1": w1, "b1": b1.reshape(1, dff),
            "w2": w2, "b2": b2.reshape(1, d_model)}


def init_decoder_block(key, d_model, dff, h):
    k_self, k_cross, k_ffn = jax.random.split(key, 3)
    params = {
        "self_attn": _init_mha(k_self, d_model, h),
        "cross_attn": _init_mha(k_cross, d_model, h),
        "ffn": _init_ffn(k_ffn, d_model, dff),
    }
    for i in range(3):
        params[f"ln{i}_alpha"] = jnp.ones((1, 1), jnp.float32)   # torch.ones(1)
        params[f"ln{i}_beta"] = jnp.zeros((1, 1), jnp.float32)   # torch.zeros(1)
    return params


def init_decoder(key, num_layers, d_model, dff, h):
    keys = jax.random.split(key, num_layers)
    return {
        "layers": [init_decoder_block(k, d_model, dff, h) for k in keys],
        "norm_alpha": jnp.ones((1, 1), jnp.float32),
        "norm_beta": jnp.zeros((1, 1), jnp.float32),
    }


# ----------------------------------- main ------------------------------------

if __name__ == "__main__":
    B, S_TGT, S_SRC, D_MODEL, H, DFF, N_LAYERS = 2, 8, 8, 32, 4, 64, 2

    key = jax.random.PRNGKey(0)
    kx, ke, kp = jax.random.split(key, 3)
    x = jax.random.normal(kx, (B, S_TGT, D_MODEL), jnp.float32)
    encoder_output = jax.random.normal(ke, (B, S_SRC, D_MODEL), jnp.float32)
    # Masks accepted for signature parity (no effect, see faithfulness notes).
    src_mask = jnp.ones((B, 1, 1, S_SRC), jnp.float32)
    tgt_mask = jnp.tril(jnp.ones((S_TGT, S_TGT), jnp.float32))[None, None]

    params = init_decoder(kp, N_LAYERS, D_MODEL, DFF, H)

    out = decoder(x, encoder_output, src_mask, tgt_mask, params, H)
    out = jax.block_until_ready(out)
    assert out.shape == (B, S_TGT, D_MODEL) and out.dtype == jnp.float32
    assert bool(jnp.all(jnp.isfinite(out)))
    print("KERNEL_OK")
</pallas_src>

<mosaic_0001>
module attributes {stable_mosaic.version = 11 : i64} {
  func.func @_attention_block_kernel(%arg0: i32, %arg1: memref<1x1xf32, #tpu.memory_space<smem>>, %arg2: memref<1x1xf32, #tpu.memory_space<smem>>, %arg3: memref<1x8x32xf32, #tpu.memory_space<vmem>>, %arg4: memref<1x8x32xf32, #tpu.memory_space<vmem>>, %arg5: memref<4x32x8xf32, #tpu.memory_space<vmem>>, %arg6: memref<4x1x8xf32, #tpu.memory_space<vmem>>, %arg7: memref<4x32x8xf32, #tpu.memory_space<vmem>>, %arg8: memref<4x1x8xf32, #tpu.memory_space<vmem>>, %arg9: memref<4x32x8xf32, #tpu.memory_space<vmem>>, %arg10: memref<4x1x8xf32, #tpu.memory_space<vmem>>, %arg11: memref<4x8x32xf32, #tpu.memory_space<vmem>>, %arg12: memref<1x32xf32, #tpu.memory_space<vmem>>, %arg13: memref<1x8x32xf32, #tpu.memory_space<vmem>>) attributes {dimension_semantics = [#tpu.dimension_semantics<parallel>], iteration_bounds = array<i64: 2>, scalar_prefetch = 0 : i64, scratch_operands = 0 : i64, tpu.core_type = #tpu.core_type<tc>, window_params = [{transform_indices = @transform_0, window_bounds = array<i64: 1, 1>}, {transform_indices = @transform_1, window_bounds = array<i64: 1, 1>}, {transform_indices = @transform_2, window_bounds = array<i64: 1, 8, 32>}, {transform_indices = @transform_3, window_bounds = array<i64: 1, 8, 32>}, {pipeline_mode = #tpu.pipeline_mode<synchronous>, transform_indices = @transform_4, window_bounds = array<i64: 4, 32, 8>}, {pipeline_mode = #tpu.pipeline_mode<synchronous>, transform_indices = @transform_5, window_bounds = array<i64: 4, 1, 8>}, {pipeline_mode = #tpu.pipeline_mode<synchronous>, transform_indices = @transform_6, window_bounds = array<i64: 4, 32, 8>}, {pipeline_mode = #tpu.pipeline_mode<synchronous>, transform_indices = @transform_7, window_bounds = array<i64: 4, 1, 8>}, {pipeline_mode = #tpu.pipeline_mode<synchronous>, transform_indices = @transform_8, window_bounds = array<i64: 4, 32, 8>}, {pipeline_mode = #tpu.pipeline_mode<synchronous>, transform_indices = @transform_9, window_bounds = array<i64: 4, 1, 8>}, {pipeline_mode = #tpu.pipeline_mode<synchronous>, transform_indices = @transform_10, window_bounds = array<i64: 4, 8, 32>}, {pipeline_mode = #tpu.pipeline_mode<synchronous>, transform_indices = @transform_11, window_bounds = array<i64: 1, 32>}, {transform_indices = @transform_12, window_bounds = array<i64: 1, 8, 32>}]} {
    %c0 = arith.constant 0 : index
    %c0_0 = arith.constant 0 : index
    %c0_1 = arith.constant 0 : index
    %0 = vector.load %arg3[%c0, %c0_0, %c0_1] : memref<1x8x32xf32, #tpu.memory_space<vmem>>, vector<1x8x32xf32>
    %1 = vector.shape_cast %0 : vector<1x8x32xf32> to vector<8x32xf32>
    %c0_2 = arith.constant 0 : index
    %c0_3 = arith.constant 0 : index
    %2 = memref.load %arg1[%c0_2, %c0_3] : memref<1x1xf32, #tpu.memory_space<smem>>
    %c0_4 = arith.constant 0 : index
    %c0_5 = arith.constant 0 : index
    %3 = memref.load %arg2[%c0_4, %c0_5] : memref<1x1xf32, #tpu.memory_space<smem>>
    %cst = arith.constant dense<0.000000e+00> : vector<8xf32>
    %4 = vector.multi_reduction <add>, %1, %cst [1] : vector<8x32xf32> to vector<8xf32>
    %5 = vector.shape_cast %4 : vector<8xf32> to vector<8x1xf32>
    %cst_6 = arith.constant 3.200000e+01 : f32
    %6 = vector.broadcast %cst_6 : f32 to vector<8x1xf32>
    %7 = arith.divf %5, %6 : vector<8x1xf32>
    %8 = vector.broadcast %7 : vector<8x1xf32> to vector<8x32xf32>
    %9 = arith.subf %1, %8 : vector<8x32xf32>
    %10 = arith.mulf %9, %9 : vector<8x32xf32>
    %cst_7 = arith.constant dense<0.000000e+00> : vector<8xf32>
    %11 = vector.multi_reduction <add>, %10, %cst_7 [1] : vector<8x32xf32> to vector<8xf32>
    %12 = vector.shape_cast %11 : vector<8xf32> to vector<8x1xf32>
    %cst_8 = arith.constant 3.100000e+01 : f32
    %13 = vector.broadcast %cst_8 : f32 to vector<8x1xf32>
    %14 = arith.divf %12, %13 : vector<8x1xf32>
    %15 = math.sqrt %14 : vector<8x1xf32>
    %16 = vector.broadcast %7 : vector<8x1xf32> to vector<8x32xf32>
    %17 = arith.subf %1, %16 : vector<8x32xf32>
    %18 = vector.broadcast %2 : f32 to vector<8x32xf32>
    %19 = arith.mulf %18, %17 : vector<8x32xf32>
    %cst_9 = arith.constant 9.99999997E-7 : f32
    %20 = vector.broadcast %cst_9 : f32 to vector<8x1xf32>
    %21 = arith.addf %15, %20 : vector<8x1xf32>
    %22 = vector.broadcast %21 : vector<8x1xf32> to vector<8x32xf32>
    %23 = arith.divf %19, %22 : vector<8x32xf32>
    %24 = vector.broadcast %3 : f32 to vector<8x32xf32>
    %25 = arith.addf %23, %24 : vector<8x32xf32>
    %26 = vector.shape_cast %25 : vector<8x32xf32> to vector<1x8x32xf32>
    %27 = vector.broadcast %26 : vector<1x8x32xf32> to vector<4x8x32xf32>
    %28 = vector.shape_cast %25 : vector<8x32xf32> to vector<1x8x32xf32>
    %29 = vector.broadcast %28 : vector<1x8x32xf32> to vector<4x8x32xf32>
    %c0_10 = arith.constant 0 : index
    %c0_11 = arith.constant 0 : index
    %c0_12 = arith.constant 0 : index
    %30 = vector.load %arg5[%c0_10, %c0_11, %c0_12] : memref<4x32x8xf32, #tpu.memory_space<vmem>>, vector<4x32x8xf32>
    "tpu.trace_start"() <{level = 10 : i32, message = "hsd,hde->hse"}> : () -> ()
    %cst_13 = arith.constant dense<0.000000e+00> : vector<4x8x8xf32>
    %31 = tpu.matmul %27, %30, %cst_13 {dimension_numbers = #tpu.dot_dimension_numbers<[2], [1], [1], [2], [0, 0, 0, 1, 1, 2], [0], [0]>} : vector<4x8x32xf32>, vector<4x32x8xf32>, vector<4x8x8xf32> -> vector<4x8x8xf32>
    "tpu.trace_stop"() : () -> ()
    %c0_14 = arith.constant 0 : index
    %c0_15 = arith.constant 0 : index
    %c0_16 = arith.constant 0 : index
    %32 = vector.load %arg6[%c0_14, %c0_15, %c0_16] : memref<4x1x8xf32, #tpu.memory_space<vmem>>, vector<4x1x8xf32>
    %33 = vector.broadcast %32 : vector<4x1x8xf32> to vector<4x8x8xf32>
    %34 = arith.addf %31, %33 : vector<4x8x8xf32>
    %c0_17 = arith.constant 0 : index
    %c0_18 = arith.constant 0 : index
    %c0_19 = arith.constant 0 : index
    %35 = vector.load %arg7[%c0_17, %c0_18, %c0_19] : memref<4x32x8xf32, #tpu.memory_space<vmem>>, vector<4x32x8xf32>
    "tpu.trace_start"() <{level = 10 : i32, message = "hsd,hde->hse"}> : () -> ()
    %cst_20 = arith.constant dense<0.000000e+00> : vector<4x8x8xf32>
    %36 = tpu.matmul %29, %35, %cst_20 {dimension_numbers = #tpu.dot_dimension_numbers<[2], [1], [1], [2], [0, 0, 0, 1, 1, 2], [0], [0]>} : vector<4x8x32xf32>, vector<4x32x8xf32>, vector<4x8x8xf32> -> vector<4x8x8xf32>
    "tpu.trace_stop"() : () -> ()
    %c0_21 = arith.constant 0 : index
    %c0_22 = arith.constant 0 : index
    %c0_23 = arith.constant 0 : index
    %37 = vector.load %arg8[%c0_21, %c0_22, %c0_23] : memref<4x1x8xf32, #tpu.memory_space<vmem>>, vector<4x1x8xf32>
    %38 = vector.broadcast %37 : vector<4x1x8xf32> to vector<4x8x8xf32>
    %39 = arith.addf %36, %38 : vector<4x8x8xf32>
    %c0_24 = arith.constant 0 : index
    %c0_25 = arith.constant 0 : index
    %c0_26 = arith.constant 0 : index
    %40 = vector.load %arg9[%c0_24, %c0_25, %c0_26] : memref<4x32x8xf32, #tpu.memory_space<vmem>>, vector<4x32x8xf32>
    "tpu.trace_start"() <{level = 10 : i32, message = "hsd,hde->hse"}> : () -> ()
    %cst_27 = arith.constant dense<0.000000e+00> : vector<4x8x8xf32>
    %41 = tpu.matmul %29, %40, %cst_27 {dimension_numbers = #tpu.dot_dimension_numbers<[2], [1], [1], [2], [0, 0, 0, 1, 1, 2], [0], [0]>} : vector<4x8x32xf32>, vector<4x32x8xf32>, vector<4x8x8xf32> -> vector<4x8x8xf32>
    "tpu.trace_stop"() : () -> ()
    %c0_28 = arith.constant 0 : index
    %c0_29 = arith.constant 0 : index
    %c0_30 = arith.constant 0 : index
    %42 = vector.load %arg10[%c0_28, %c0_29, %c0_30] : memref<4x1x8xf32, #tpu.memory_space<vmem>>, vector<4x1x8xf32>
    %43 = vector.broadcast %42 : vector<4x1x8xf32> to vector<4x8x8xf32>
    %44 = arith.addf %41, %43 : vector<4x8x8xf32>
    %cst_31 = arith.constant 0.353553385 : f32
    %45 = vector.broadcast %cst_31 : f32 to vector<4x8x8xf32>
    %46 = arith.mulf %34, %45 : vector<4x8x8xf32>
    "tpu.trace_start"() <{level = 10 : i32, message = "hqd,hkd->hqk"}> : () -> ()
    %cst_32 = arith.constant dense<0.000000e+00> : vector<4x8x8xf32>
    %47 = tpu.matmul %46, %39, %cst_32 {dimension_numbers = #tpu.dot_dimension_numbers<[2], [2], [1], [1], [0, 0, 0, 1, 1, 1], [0], [0]>} : vector<4x8x8xf32>, vector<4x8x8xf32>, vector<4x8x8xf32> -> vector<4x8x8xf32>
    "tpu.trace_stop"() : () -> ()
    %cst_33 = arith.constant dense<0xFF800000> : vector<4x8xf32>
    %48 = vector.multi_reduction <maximumf>, %47, %cst_33 [2] : vector<4x8x8xf32> to vector<4x8xf32>
    %49 = vector.shape_cast %48 : vector<4x8xf32> to vector<4x8x1xf32>
    %50 = vector.broadcast %49 : vector<4x8x1xf32> to vector<4x8x8xf32>
    %51 = arith.subf %47, %50 : vector<4x8x8xf32>
    %52 = math.exp %51 : vector<4x8x8xf32>
    %cst_34 = arith.constant dense<0.000000e+00> : vector<4x8xf32>
    %53 = vector.multi_reduction <add>, %52, %cst_34 [2] : vector<4x8x8xf32> to vector<4x8xf32>
    %54 = vector.shape_cast %53 : vector<4x8xf32> to vector<4x8x1xf32>
    %55 = tpu.reciprocal %54 {approx = true} : vector<4x8x1xf32> -> vector<4x8x1xf32>
    %56 = vector.broadcast %55 : vector<4x8x1xf32> to vector<4x8x8xf32>
    %57 = arith.mulf %52, %56 : vector<4x8x8xf32>
    "tpu.trace_start"() <{level = 10 : i32, message = "hqk,hkd->hqd"}> : () -> ()
    %cst_35 = arith.constant dense<0.000000e+00> : vector<4x8x8xf32>
    %58 = tpu.matmul %57, %44, %cst_35 {dimension_numbers = #tpu.dot_dimension_numbers<[2], [1], [1], [2], [0, 0, 0, 1, 1, 2], [0], [0]>} : vector<4x8x8xf32>, vector<4x8x8xf32>, vector<4x8x8xf32> -> vector<4x8x8xf32>
    "tpu.trace_stop"() : () -> ()
    %c0_36 = arith.constant 0 : index
    %c0_37 = arith.constant 0 : index
    %c0_38 = arith.constant 0 : index
    %59 = vector.load %arg11[%c0_36, %c0_37, %c0_38] : memref<4x8x32xf32, #tpu.memory_space<vmem>>, vector<4x8x32xf32>
    "tpu.trace_start"() <{level = 10 : i32, message = "hqd,hde->hqe"}> : () -> ()
    %cst_39 = arith.constant dense<0.000000e+00> : vector<4x8x32xf32>
    %60 = tpu.matmul %58, %59, %cst_39 {dimension_numbers = #tpu.dot_dimension_numbers<[2], [1], [1], [2], [0, 0, 0, 1, 1, 2], [0], [0]>} : vector<4x8x8xf32>, vector<4x8x32xf32>, vector<4x8x32xf32> -> vector<4x8x32xf32>
    "tpu.trace_stop"() : () -> ()
    %cst_40 = arith.constant dense<0.000000e+00> : vector<8x32xf32>
    %61 = vector.multi_reduction <add>, %60, %cst_40 [0] : vector<4x8x32xf32> to vector<8x32xf32>
    %62 = arith.addf %1, %61 : vector<8x32xf32>
    %c0_41 = arith.constant 0 : index
    %c0_42 = arith.constant 0 : index
    %63 = vector.load %arg12[%c0_41, %c0_42] : memref<1x32xf32, #tpu.memory_space<vmem>>, vector<1x32xf32>
    %64 = vector.broadcast %63 : vector<1x32xf32> to vector<8x32xf32>
    %65 = arith.addf %62, %64 : vector<8x32xf32>
    %c0_43 = arith.constant 0 : index
    %c0_44 = arith.constant 0 : index
    %c0_45 = arith.constant 0 : index
    %66 = vector.load %arg13[%c0_43, %c0_44, %c0_45] : memref<1x8x32xf32, #tpu.memory_space<vmem>>, vector<1x8x32xf32>
    %67 = vector.shape_cast %66 : vector<1x8x32xf32> to vector<8x32xf32>
    %68 = vector.shape_cast %65 : vector<8x32xf32> to vector<1x8x32xf32>
    tpu.vector_store %arg13[%c0_43, %c0_44, %c0_45], %68 {strides = array<i32>} : memref<1x8x32xf32, #tpu.memory_space<vmem>>, vector<1x8x32xf32>,
    return
  }
  func.func @transform_0(%arg0: i32) -> (i32, i32) {
    %c0_i32 = arith.constant 0 : i32
    %c0_i32_0 = arith.constant 0 : i32
    %c0_i32_1 = arith.constant 0 : i32
    return %c0_i32, %c0_i32_0 : i32, i32
  }
  func.func @transform_1(%arg0: i32) -> (i32, i32) {
    %c0_i32 = arith.constant 0 : i32
    %c0_i32_0 = arith.constant 0 : i32
    %c0_i32_1 = arith.constant 0 : i32
    return %c0_i32, %c0_i32_0 : i32, i32
  }
  func.func @transform_2(%arg0: i32) -> (i32, i32, i32) {
    %c0_i32 = arith.constant 0 : i32
    %c0_i32_0 = arith.constant 0 : i32
    %c0_i32_1 = arith.constant 0 : i32
    return %arg0, %c0_i32, %c0_i32_0 : i32, i32, i32
  }
  func.func @transform_3(%arg0: i32) -> (i32, i32, i32) {
    %c0_i32 = arith.constant 0 : i32
    %c0_i32_0 = arith.constant 0 : i32
    %c0_i32_1 = arith.constant 0 : i32
    return %arg0, %c0_i32, %c0_i32_0 : i32, i32, i32
  }
  func.func @transform_4(%arg0: i32) -> (i32, i32, i32) {
    %c0_i32 = arith.constant 0 : i32
    %c0_i32_0 = arith.constant 0 : i32
    %c0_i32_1 = arith.constant 0 : i32
    %c0_i32_2 = arith.constant 0 : i32
    return %c0_i32, %c0_i32_0, %c0_i32_1 : i32, i32, i32
  }
  func.func @transform_5(%arg0: i32) -> (i32, i32, i32) {
    %c0_i32 = arith.constant 0 : i32
    %c0_i32_0 = arith.constant 0 : i32
    %c0_i32_1 = arith.constant 0 : i32
    %c0_i32_2 = arith.constant 0 : i32
    return %c0_i32, %c0_i32_0, %c0_i32_1 : i32, i32, i32
  }
  func.func @transform_6(%arg0: i32) -> (i32, i32, i32) {
    %c0_i32 = arith.constant 0 : i32
    %c0_i32_0 = arith.constant 0 : i32
    %c0_i32_1 = arith.constant 0 : i32
    %c0_i32_2 = arith.constant 0 : i32
    return %c0_i32, %c0_i32_0, %c0_i32_1 : i32, i32, i32
  }
  func.func @transform_7(%arg0: i32) -> (i32, i32, i32) {
    %c0_i32 = arith.constant 0 : i32
    %c0_i32_0 = arith.constant 0 : i32
    %c0_i32_1 = arith.constant 0 : i32
    %c0_i32_2 = arith.constant 0 : i32
    return %c0_i32, %c0_i32_0, %c0_i32_1 : i32, i32, i32
  }
  func.func @transform_8(%arg0: i32) -> (i32, i32, i32) {
    %c0_i32 = arith.constant 0 : i32
    %c0_i32_0 = arith.constant 0 : i32
    %c0_i32_1 = arith.constant 0 : i32
    %c0_i32_2 = arith.constant 0 : i32
    return %c0_i32, %c0_i32_0, %c0_i32_1 : i32, i32, i32
  }
  func.func @transform_9(%arg0: i32) -> (i32, i32, i32) {
    %c0_i32 = arith.constant 0 : i32
    %c0_i32_0 = arith.constant 0 : i32
    %c0_i32_1 = arith.constant 0 : i32
    %c0_i32_2 = arith.constant 0 : i32
    return %c0_i32, %c0_i32_0, %c0_i32_1 : i32, i32, i32
  }
  func.func @transform_10(%arg0: i32) -> (i32, i32, i32) {
    %c0_i32 = arith.constant 0 : i32
    %c0_i32_0 = arith.constant 0 : i32
    %c0_i32_1 = arith.constant 0 : i32
    %c0_i32_2 = arith.constant 0 : i32
    return %c0_i32, %c0_i32_0, %c0_i32_1 : i32, i32, i32
  }
  func.func @transform_11(%arg0: i32) -> (i32, i32) {
    %c0_i32 = arith.constant 0 : i32
    %c0_i32_0 = arith.constant 0 : i32
    %c0_i32_1 = arith.constant 0 : i32
    return %c0_i32, %c0_i32_0 : i32, i32
  }
  func.func @transform_12(%arg0: i32) -> (i32, i32, i32) {
    %c0_i32 = arith.constant 0 : i32
    %c0_i32_0 = arith.constant 0 : i32
    %c0_i32_1 = arith.constant 0 : i32
    return %arg0, %c0_i32, %c0_i32_0 : i32, i32, i32
  }
}

</mosaic_0001>

<bundles_post_ra>
// kernel: tpu_custom_call.1
= control target key start
LH: loop header
LB: loop body
LE: loop exit
PB: predicated region body
PF: predicated region fallthrough
CT: control target
= control target key end

     0   :  { %s3520_s0 = inlined_call_operand.<no memory space> [shape: f32[1,1], index: 0, kind: input, shape index: {}]   ;;  %s3521_s1 = inlined_call_operand.<no memory space> [shape: f32[1,1], index: 1, kind: input, shape index: {}]   ;;  %s3522_s2 = inlined_call_operand.vmem [shape: f32[2,8,32], index: 2, kind: input, shape index: {}]   ;;  %s3523_s3 = inlined_call_operand.vmem [shape: f32[2,8,32], index: 3, kind: input, shape index: {}]   ;;  %s3524_s4 = inlined_call_operand.vmem [shape: f32[4,32,8], index: 4, kind: input, shape index: {}]   ;;  %s3525_s5 = inlined_call_operand.vmem [shape: f32[4,1,8], index: 5, kind: input, shape index: {}]   ;;  %s3526_s6 = inlined_call_operand.vmem [shape: f32[4,32,8], index: 6, kind: input, shape index: {}]   ;;  %s3527_s7 = inlined_call_operand.vmem [shape: f32[4,1,8], index: 7, kind: input, shape index: {}]   ;;  %s3528_s8 = inlined_call_operand.vmem [shape: f32[4,32,8], index: 8, kind: input, shape index: {}]   ;;  %s3529_s9 = inlined_call_operand.vmem [shape: f32[4,1,8], index: 9, kind: input, shape index: {}]   ;;  %s3530_s10 = inlined_call_operand.vmem [shape: f32[4,8,32], index: 10, kind: input, shape index: {}]   ;;  %s3531_s11 = inlined_call_operand.vmem [shape: f32[1,32], index: 11, kind: input, shape index: {}]   ;;  %s3532_s12 = inlined_call_operand.hbm [shape: f32[2,8,32], index: 12, kind: output, shape index: {}]  }
   0x1   :  { %17 = sst [smem:[#allocation2]] %s3520_s0 }
   0x2   :  { %18 = sst [smem:[#allocation3]] %s3521_s1 }
   0x3   :  { %19 = vsyncpa [#allocation5], 0 }
   0x4   :  { %21 = vsyncpa [#allocation5 + $0x1], 0  ;;  %s3076_s24 = smov 0   ;;  %s3078_s25 = smov 0  }
   0x5   :  { %s3080_s26 = smov 0   ;;  %s3082_s27 = smov 0  }
   0x6 LB: > { %s3097_s0 = sadd.s32 4294967295, %s2999_s27   ;;  %s2476_s1 = sadd.s32 4294967294, %s2999_s27   ;;  %s2999_s27 = sphi %s3082_s27, %s3538_s27   ;;  %s2995_s26 = sphi %s3080_s26, %s3537_s26   ;;  %s2991_s25 = sphi %s3078_s25, %s3536_s25   ;;  %s2987_s24 = sphi %s3076_s24, %s3535_s24  }
   0x7   : > { %s3101_s28 = sadd.s32 1, %s2999_s27   ;;  %s296_s29 = sadd.s32 1, %s2995_s26 }
   0x8   : > { %s293_s30 = ssub.s32 %s2999_s27, %s3101_s28  ;;  %p306_p0 = scmp.ne.s32.totalorder %s2995_s26, %s2991_s25 }
   0x9   : > { %p294_p1 = scmp.eq.s32.totalorder %s293_s30, 0  ;;  %p307_p2 = scmp.eq.s32.totalorder %s3097_s0, 1 }
   0xa   : > { %p312_p3 = scmp.ne.s32.totalorder %s2991_s25, %s2987_s24  ;;  %p313_p4 = scmp.eq.s32.totalorder %s2476_s1, 1 }
   0xb   : > { %s3112_s13 = scalar_select %p294_p1, %s2995_s26, %s296_s29  }
   0xc   : > { %p3114_p5 = por %p307_p2, %p306_p0  ;;  %p3118_p6 = por %p313_p4, %p312_p3 }
   0xd   : > { %p2479_p7 = scmp.ge.s32.totalorder %s2999_s27, 1  ;;  %p375_p8 = scmp.lt.s32.totalorder %s2999_s27, 3 }
   0xf   : > { %p376_p9 = pnand %p2479_p7, %p375_p8 }
  0x10   : > { %p420_p10 = scmp.lt.s32.totalorder (!%p376_p9), %s3097_s0, 1  ;;  %vm431_vm0 = vcmask (!%p376_p9), 261120   ;;  %v458_v7 = vld [vmem:[%s3524_s4] sm:$0xff] (!%p376_p9)  ;;  %v459_v8 = vld [vmem:[%s3524_s4 + $0x8] sm:$0xff] (!%p376_p9)  ;;  %v3001_v12 = vmov (!%p376_p9), 0.0|0.0   ;;  %v460_v14 = vld [vmem:[%s3524_s4 + $0x10] sm:$0xff] (!%p376_p9) }
  0x11   : > { %379 = sbr.rel (%p376_p9) target bundleno = 1570 (0x622), region = 68  ;;  %v462_v9 = vld [vmem:[%s3524_s4 + $0x20] sm:$0xff] (!%p376_p9)  ;;  %v2804_v10 = vpack.c.bf16 (!%p376_p9), %v459_v8, %v458_v7  ;;  %v463_v11 = vld [vmem:[%s3524_s4 + $0x28] sm:$0xff] (!%p376_p9)  ;;  %2803 = vmatprep.subr.bf16.mxu0 (!%p376_p9), %v3001_v12  ;;  %2809 = vmatprep.subr.bf16.mxu1 (!%p376_p9), %v3001_v12  ;;  %v461_v15 = vld [vmem:[%s3524_s4 + $0x18] sm:$0xff] (!%p376_p9)  ;;  %vm3002_vm1 = vmmov (!%p376_p9), 0   ;;  %v3003_v20 = vmov (!%p376_p9), 0.0  }
  0x12   : > { %v2810_v13 = vpack.c.bf16 (!%p376_p9), %v463_v11, %v462_v9  ;;  %v464_v16 = vld [vmem:[%s3524_s4 + $0x30] sm:$0xff] (!%p376_p9)  ;;  %v2807_v17 = vpack.c.bf16 (!%p376_p9), %v461_v15, %v460_v14  ;;  %v465_v18 = vld [vmem:[%s3524_s4 + $0x38] sm:$0xff] (!%p376_p9)  ;;  %2619 = vmatprep.mubr.msk.f32.mxu0 (!%p376_p9), %vm3002_vm1, %v3003_v20  ;;  %2630 = vmatprep.mubr.msk.f32.mxu1 (!%p376_p9), %vm3002_vm1, %v3003_v20  ;;  %s429_s1 = sld [smem:[#allocation2]] (!%p376_p9)  ;;  %v466_v30 = vld [vmem:[%s3524_s4 + $0x40] sm:$0xff] (!%p376_p9)  ;;  %vm1437_vm4 = vcmask (!%p376_p9), 64512   ;;  %s2524_s22 = sshll.u32 (!%p376_p9), %s3097_s0, 7 }
  0x13   : > { %2805 = vmatpush3.bf16.msra.mxu0 (!%p376_p9), %v2804_v10  ;;  %v2813_v19 = vpack.c.bf16 (!%p376_p9), %v465_v18, %v464_v16  ;;  %s430_s29 = sld [smem:[#allocation3]] (!%p376_p9)  ;;  %v467_v32 = vld [vmem:[%s3524_s4 + $0x48] sm:$0xff] (!%p376_p9)  ;;  %v470_v33 = vld [vmem:[%s3524_s4 + $0x60] sm:$0xff] (!%p376_p9)  ;;  %v468_v40 = vld [vmem:[%s3524_s4 + $0x50] sm:$0xff] (!%p376_p9) }
  0x14   : > { %2811 = vmatpush3.bf16.msra.mxu1 (!%p376_p9), %v2810_v13  ;;  %2806 = vmatprep.subr.bf16.mxu0 (!%p376_p9), %v3001_v12  ;;  %v471_v34 = vld [vmem:[%s3524_s4 + $0x68] sm:$0xff] (!%p376_p9)  ;;  %v2816_v38 = vpack.c.bf16 (!%p376_p9), %v467_v32, %v466_v30  ;;  %v469_v42 = vld [vmem:[%s3524_s4 + $0x58] sm:$0xff] (!%p376_p9)  ;;  %v472_v43 = vld [vmem:[%s3524_s4 + $0x70] sm:$0xff] (!%p376_p9) }
  0x15   : > { %2812 = vmatprep.subr.bf16.mxu1 (!%p376_p9), %v3001_v12  ;;  %v2822_v39 = vpack.c.bf16 (!%p376_p9), %v471_v34, %v470_v33  ;;  %v473_v44 = vld [vmem:[%s3524_s4 + $0x78] sm:$0xff] (!%p376_p9)  ;;  %v2819_v45 = vpack.c.bf16 (!%p376_p9), %v469_v42, %v468_v40  ;;  %v785_v47 = vld [vmem:[%s3526_s6] sm:$0xff] (!%p376_p9)  ;;  %v786_v48 = vld [vmem:[%s3526_s6 + $0x8] sm:$0xff] (!%p376_p9) }
  0x16   : > { %v2825_v46 = vpack.c.bf16 (!%p376_p9), %v473_v44, %v472_v43  ;;  %v789_v49 = vld [vmem:[%s3526_s6 + $0x20] sm:$0xff] (!%p376_p9)  ;;  %v790_v50 = vld [vmem:[%s3526_s6 + $0x28] sm:$0xff] (!%p376_p9)  ;;  %v2828_v51 = vpack.c.bf16 (!%p376_p9), %v786_v48, %v785_v47  ;;  %v787_v53 = vld [vmem:[%s3526_s6 + $0x10] sm:$0xff] (!%p376_p9) }
  0x17   : > { %2808 = vmatpush3.bf16.msra.mxu0 (!%p376_p9), %v2807_v17  ;;  %v2834_v52 = vpack.c.bf16 (!%p376_p9), %v790_v50, %v789_v49  ;;  %v788_v54 = vld [vmem:[%s3526_s6 + $0x18] sm:$0xff] (!%p376_p9)  ;;  %v791_v55 = vld [vmem:[%s3526_s6 + $0x30] sm:$0xff] (!%p376_p9)  ;;  %v793_v59 = vld [vmem:[%s3526_s6 + $0x40] sm:$0xff] (!%p376_p9) }
  0x18   : > { %s421_s3 = scalar_select %p420_p10, %s3097_s0, 1  ;;  %2814 = vmatpush3.bf16.msra.mxu1 %v2813_v19  ;;  %2815 = vmatprep.subr.bf16.mxu0 %v3001_v12  ;;  %v451_v29 = vstv %s429_s1  ;;  %v792_v56 = vld [vmem:[%s3526_s6 + $0x38] sm:$0xff]  ;;  %v2831_v57 = vpack.c.bf16 %v788_v54, %v787_v53  ;;  %v794_v60 = vld [vmem:[%s3526_s6 + $0x48] sm:$0xff]  ;;  %v797_v61 = vld [vmem:[%s3526_s6 + $0x60] sm:$0xff] }
  0x19   : > { %2821 = vmatprep.subr.bf16.mxu1 %v3001_v12  ;;  %v456_v36 = vstv %s430_s29  ;;  %v2837_v58 = vpack.c.bf16 %v792_v56, %v791_v55  ;;  %v798_v62 = vld [vmem:[%s3526_s6 + $0x68] sm:$0xff]  ;;  %v2840_v63 = vpack.c.bf16 %v794_v60, %v793_v59  ;;  %v1109_v8 = vld [vmem:[%s3528_s8] sm:$0xff]  ;;  %v1111_v15 = vld [vmem:[%s3528_s8 + $0x10] sm:$0xff]  ;;  %s417_s29 = sand.u32 1, %s2991_s25   ;;  %s3004_s0 = smov [#allocation4]  }
  0x1a   : > { %s2481_s16 = sshll.u32 %s421_s3, 3  ;;  %v1110_v9 = vld [vmem:[%s3528_s8 + $0x8] sm:$0xff]  ;;  %v1113_v10 = vld [vmem:[%s3528_s8 + $0x20] sm:$0xff]  ;;  %v1112_v16 = vld [vmem:[%s3528_s8 + $0x18] sm:$0xff]  ;;  %s2392_s17 = scalar_lea.sflag [#allocation5], %s417_s29 }
  0x1b   : > { %s423_s19 = scalar_lea.vmem %s3522_s2, %s2481_s16  ;;  %v1114_v11 = vld [vmem:[%s3528_s8 + $0x28] sm:$0xff]  ;;  %v2852_v13 = vpack.c.bf16 %v1110_v9, %v1109_v8  ;;  %v1115_v17 = vld [vmem:[%s3528_s8 + $0x30] sm:$0xff]  ;;  %v1116_v18 = vld [vmem:[%s3528_s8 + $0x38] sm:$0xff]  ;;  %v2855_v19 = vpack.c.bf16 %v1112_v16, %v1111_v15  ;;  %s3477_s16 = scalar_lea.hbm %s3532_s12, %s2524_s22 }
  0x1c   : > { %v3129_v0 = vld [vmem:[%s423_s19] sm:$0xff]  ;;  %v2858_v14 = vpack.c.bf16 %v1114_v11, %v1113_v10  ;;  %v1123_v30 = vld [vmem:[%s3528_s8 + $0x70] sm:$0xff]  ;;  %s2480_s19 = sshll.u32 %s417_s29, 3 }
  0x1d   : > { %v432_v1 = vsel %vm431_vm0, %v3129_v0, 0.0  ;;  %v2482_v42 = vld [vmem:[%s3525_s5] ss:$0 sm:$0xff]  ;;  %v2491_v44 = vld [vmem:[%s3527_s7 + $0x1] ss:$0 sm:$0xff]  ;;  %s419_s23 = scalar_lea.vmem [#allocation4], %s2480_s19 }
  0x1e   : > { %433 = vadd.xlane.f32.xlu0 %v432_v1  ;;  %v2846_v1 = vpack.c.bf16 %v798_v62, %v797_v61  ;;  %v2490_v43 = vld [vmem:[%s3527_s7] ss:$0 sm:$0xff]  ;;  %v2484_v55 = vld [vmem:[%s3525_s5 + $0x2] ss:$0 sm:$0xff]  ;;  %v2485_v56 = vld [vmem:[%s3525_s5 + $0x3] ss:$0 sm:$0xff] }
  0x1f   : > { %s2405_s1 = sshll.u32 %s419_s23, 4  ;;  %s2941_s19 = sshll.u32 %s3004_s0, 4  ;;  %s3479_s1 = int_to_ptr.vmem [resolvable:$true] %s2405_s1  ;;  %s2942_s19 = int_to_ptr.vmem [resolvable:$false] %s2941_s19 }
  0x20   : > { %s2937_s18 = scalar_lea.vmem %s3479_s1, 128  ;;  %s2943_s20 = scalar_lea.vmem %s2942_s19, 256 }
  0x21   : > { %p2938_p11 = scmp.ne.s32.totalorder %s3479_s1, %s2937_s18  ;;  %p2944_p0 = scmp.lt.s32.totalorder %s3479_s1, %s2942_s19 }
  0x22   : > { %p2945_p1 = scmp.lt.s32.totalorder %s2943_s20, %s2937_s18 }
  0x23   : > { %p2939_p12 = pnand %p2938_p11, %p3114_p5 }
  0x24   : > { %p2946_p2 = por %p2945_p1, %p2944_p0 }
  0x25   : > { %p2940_p13 = pneg %p2939_p12 }
  0x27   : > { %p2947_p3 = pnand %p2946_p2, %p2940_p13 }
  0xab   : > { %v434_v2 = vpop.xlane.xlu0 %433 }
  0xac   : > { %v436_v3 = vmul.f32 0.03125, %v434_v2  ;;  %v795_v2 = vld [vmem:[%s3526_s6 + $0x50] sm:$0xff] }
  0xae   : > { %v437_v4 = vsub.f32 %v3129_v0, %v436_v3  ;;  %v796_v3 = vld [vmem:[%s3526_s6 + $0x58] sm:$0xff] }
  0xb0   : > { %v438_v5 = vmul.f32 %v437_v4, %v437_v4  ;;  %v452_v31 = vmul.f32 %v451_v29, %v437_v4  ;;  %v799_v4 = vld [vmem:[%s3526_s6 + $0x70] sm:$0xff]  ;;  %v1120_v29 = vld [vmem:[%s3528_s8 + $0x58] sm:$0xff] }
  0xb2   : > { %v439_v6 = vsel %vm431_vm0, %v438_v5, 0.0  ;;  %v800_v5 = vld [vmem:[%s3526_s6 + $0x78] sm:$0xff] }
  0xb3   : > { %440 = vadd.xlane.f32.xlu0 %v439_v6  ;;  %v2843_v6 = vpack.c.bf16 %v796_v3, %v795_v2  ;;  %v2849_v7 = vpack.c.bf16 %v800_v5, %v799_v4 }
 0x140   : > { %v441_v21 = vpop.xlane.xlu0 %440 }
 0x141   : > { %v443_v22 = vmul.f32 0.032258064, %v441_v21  ;;  %v2861_v21 = vpack.c.bf16 %v1116_v18, %v1115_v17 }
 0x143   : > { %2917 = vrsqrt.f32 %v443_v22  ;;  %vm446_vm2 = vcmp.eq.f32.partialorder %v443_v22, inf  ;;  %v449_v25 = vand.u32 2147483648, %v443_v22  ;;  %vm448_vm3 = vcmp.eq.f32.partialorder %v443_v22, 0.0 }
 0x14d   : > { %v2918_v23 = vpop.eup %2917 }
 0x14e   : > { %v445_v24 = vmul.f32 %v2918_v23, %v443_v22  ;;  %v1118_v23 = vld [vmem:[%s3528_s8 + $0x48] sm:$0xff] }
 0x150   : > { %v447_v26 = vsel %vm446_vm2, %v443_v22, %v445_v24  ;;  %v1117_v22 = vld [vmem:[%s3528_s8 + $0x40] sm:$0xff] }
 0x151   : > { %v450_v27 = vsel %vm448_vm3, %v449_v25, %v447_v26  ;;  %v1121_v24 = vld [vmem:[%s3528_s8 + $0x60] sm:$0xff]  ;;  %v1122_v25 = vld [vmem:[%s3528_s8 + $0x68] sm:$0xff]  ;;  %v2864_v26 = vpack.c.bf16 %v1118_v23, %v1117_v22 }
 0x152   : > { %v453_v28 = vadd.f32 1e-06, %v450_v27  ;;  %v2870_v27 = vpack.c.bf16 %v1122_v25, %v1121_v24 }
 0x154   : > { %2919 = vrcp.f32 %v453_v28  ;;  %v1119_v28 = vld [vmem:[%s3528_s8 + $0x50] sm:$0xff] }
 0x155   : > { %v2867_v32 = vpack.c.bf16 %v1120_v29, %v1119_v28 }
 0x15e   : > { %v2920_v35 = vpop.eup %2919 }
 0x15f   : > { %v455_v37 = vmul.f32 %v2920_v35, %v452_v31  ;;  %v1124_v31 = vld [vmem:[%s3528_s8 + $0x78] sm:$0xff] }
 0x160   : > { %v2873_v33 = vpack.c.bf16 %v1124_v31, %v1123_v30 }
 0x161   : > { %v3184_v41 = vadd.f32 %v456_v36, %v455_v37 }
 0x163   : > { %2620 = vmatmul.mubr.msk.f32.vlgmr.msra.gmra.mrb[0].mxu0 %vm431_vm0, %v3184_v41  ;;  %2631 = vmatmul.mubr.msk.f32.vlgmr.msra.gmra.mrb[0].mxu1 %vm431_vm0, %v3184_v41 }
 0x164   : > { %2817 = vmatpush3.bf16.msra.mxu0 %v2816_v38  ;;  %2823 = vmatpush3.bf16.msra.mxu1 %v2822_v39 }
 0x165   : > { %2818 = vmatprep.subr.bf16.mxu0 %v3001_v12  ;;  %2824 = vmatprep.subr.bf16.mxu1 %v3001_v12 }
 0x166   : > { %2641 = vmatprep.mubr.msk.f32.mxu0 %vm3002_vm1, %v3003_v20  ;;  %2652 = vmatprep.mubr.msk.f32.mxu1 %vm3002_vm1, %v3003_v20 }
 0x168   : > { %2820 = vmatpush3.bf16.msra.mxu0 %v2819_v45  ;;  %2826 = vmatpush3.bf16.msra.mxu1 %v2825_v46 }
 0x169   : > { %2827 = vmatprep.subr.bf16.mxu0 %v3001_v12  ;;  %2833 = vmatprep.subr.bf16.mxu1 %v3001_v12 }
 0x16b   : > { %2642 = vmatmul.mubr.msk.f32.vlgmr.msra.gmra.mrb[2].mxu0 %vm431_vm0, %v3184_v41  ;;  %2653 = vmatmul.mubr.msk.f32.vlgmr.msra.gmra.mrb[2].mxu1 %vm431_vm0, %v3184_v41 }
 0x16c   : > { %2829 = vmatpush3.bf16.msra.mxu0 %v2828_v51  ;;  %2835 = vmatpush3.bf16.msra.mxu1 %v2834_v52 }
 0x16d   : > { %2830 = vmatprep.subr.bf16.mxu0 %v3001_v12  ;;  %2836 = vmatprep.subr.bf16.mxu1 %v3001_v12 }
 0x16e   : > { %2663 = vmatprep.mubr.msk.f32.mxu0 %vm3002_vm1, %v3003_v20  ;;  %2674 = vmatprep.mubr.msk.f32.mxu1 %vm3002_vm1, %v3003_v20 }
 0x170   : > { %2832 = vmatpush3.bf16.msra.mxu0 %v2831_v57  ;;  %2838 = vmatpush3.bf16.msra.mxu1 %v2837_v58  ;;  %v2492_v57 = vld [vmem:[%s3527_s7 + $0x2] ss:$0 sm:$0xff]  ;;  %v2493_v58 = vld [vmem:[%s3527_s7 + $0x3] ss:$0 sm:$0xff] }
 0x171   : > { %2839 = vmatprep.subr.bf16.mxu0 %v3001_v12  ;;  %2845 = vmatprep.subr.bf16.mxu1 %v3001_v12 }
 0x173   : > { %2664 = vmatmul.mubr.msk.f32.vlgmr.msra.gmra.mrb[4].mxu0 %vm431_vm0, %v3184_v41  ;;  %2675 = vmatmul.mubr.msk.f32.vlgmr.msra.gmra.mrb[4].mxu1 %vm431_vm0, %v3184_v41 }
 0x174   : > { %2841 = vmatpush3.bf16.msra.mxu0 %v2840_v63  ;;  %2847 = vmatpush3.bf16.msra.mxu1 %v2846_v1 }
 0x175   : > { %2842 = vmatprep.subr.bf16.mxu0 %v3001_v12  ;;  %2848 = vmatprep.subr.bf16.mxu1 %v3001_v12 }
 0x176   : > { %2685 = vmatprep.mubr.msk.f32.mxu0 %vm3002_vm1, %v3003_v20  ;;  %2696 = vmatprep.mubr.msk.f32.mxu1 %vm3002_vm1, %v3003_v20 }
 0x178   : > { %2844 = vmatpush3.bf16.msra.mxu0 %v2843_v6  ;;  %2850 = vmatpush3.bf16.msra.mxu1 %v2849_v7  ;;  %v2498_v6 = vld [vmem:[%s3529_s9] ss:$0 sm:$0xff]  ;;  %v2499_v7 = vld [vmem:[%s3529_s9 + $0x1] ss:$0 sm:$0xff] }
 0x179   : > { %2851 = vmatprep.subr.bf16.mxu0 %v3001_v12  ;;  %2857 = vmatprep.subr.bf16.mxu1 %v3001_v12 }
 0x17b   : > { %2686 = vmatmul.mubr.msk.f32.vlgmr.msra.gmra.mrb[6].mxu0 %vm431_vm0, %v3184_v41  ;;  %2697 = vmatmul.mubr.msk.f32.vlgmr.msra.gmra.mrb[6].mxu1 %vm431_vm0, %v3184_v41 }
 0x17c   : > { %2853 = vmatpush3.bf16.msra.mxu0 %v2852_v13  ;;  %2859 = vmatpush3.bf16.msra.mxu1 %v2858_v14 }
 0x17d   : > { %2854 = vmatprep.subr.bf16.mxu0 %v3001_v12  ;;  %2860 = vmatprep.subr.bf16.mxu1 %v3001_v12 }
 0x17e   : > { %2707 = vmatprep.mubr.msk.f32.mxu0 %vm3002_vm1, %v3003_v20  ;;  %2718 = vmatprep.mubr.msk.f32.mxu1 %vm3002_vm1, %v3003_v20 }
 0x180   : > { %2856 = vmatpush3.bf16.msra.mxu0 %v2855_v19  ;;  %2862 = vmatpush3.bf16.msra.mxu1 %v2861_v21 }
 0x181   : > { %2863 = vmatprep.subr.bf16.mxu0 %v3001_v12  ;;  %2869 = vmatprep.subr.bf16.mxu1 %v3001_v12 }
 0x183   : > { %2708 = vmatmul.mubr.msk.f32.vlgmr.msra.gmra.mrb[8].mxu0 %vm431_vm0, %v3184_v41  ;;  %2719 = vmatmul.mubr.msk.f32.vlgmr.msra.gmra.mrb[8].mxu1 %vm431_vm0, %v3184_v41 }
 0x184   : > { %2865 = vmatpush3.bf16.msra.mxu0 %v2864_v26  ;;  %2871 = vmatpush3.bf16.msra.mxu1 %v2870_v27 }
 0x185   : > { %2866 = vmatprep.subr.bf16.mxu0 %v3001_v12  ;;  %2872 = vmatprep.subr.bf16.mxu1 %v3001_v12 }
 0x186   : > { %2729 = vmatprep.mubr.msk.f32.mxu0 %vm3002_vm1, %v3003_v20  ;;  %2740 = vmatprep.mubr.msk.f32.mxu1 %vm3002_vm1, %v3003_v20 }
 0x188   : > { %2868 = vmatpush3.bf16.msra.mxu0 %v2867_v32  ;;  %2874 = vmatpush3.bf16.msra.mxu1 %v2873_v33 }
 0x189   : > { %2743 = vmatprep.subr.mxu0 %v3003_v20  ;;  %2748 = vmatprep.subr.mxu1 %v3003_v20 }
 0x18b   : > { %2730 = vmatmul.mubr.msk.f32.vlgmr.msra.gmra.mrb[10].mxu0 %vm431_vm0, %v3184_v41  ;;  %2741 = vmatmul.mubr.msk.f32.vlgmr.msra.gmra.mrb[10].mxu1 %vm431_vm0, %v3184_v41  ;;  %v2483_v41 = vld [vmem:[%s3525_s5 + $0x1] ss:$0 sm:$0xff] }
 0x18c   : > { %2745 = vmatprep.mubr.msk.f32.mxu0 %vm3002_vm1, %v3003_v20  ;;  %2750 = vmatprep.mubr.msk.f32.mxu1 %vm3002_vm1, %v3003_v20 }
 0x236   : > { %v571_v12 = vpop.f32.mrb[0].mxu0  ;;  %v641_v34 = vpop.f32.mrb[0].mxu1 }
 0x237   : > { %v2621_v35 = vpop.f32.mrb[1].mxu0  ;;  %v2632_v36 = vpop.f32.mrb[1].mxu1  ;;  %v572_v45 = vadd.f32 %v2482_v42, %v571_v12  ;;  %v642_v46 = vadd.f32 %v2483_v41, %v641_v34 }
 0x239   : > { %v1433_v53 = vmul.f32 0.35355338, %v572_v45  ;;  %v1434_v54 = vmul.f32 0.35355338, %v642_v46 }
 0x23e   : > { %v711_v37 = vpop.f32.mrb[2].mxu0  ;;  %v781_v38 = vpop.f32.mrb[2].mxu1 }
 0x23f   : > { %v2643_v39 = vpop.f32.mrb[3].mxu0  ;;  %v2654_v40 = vpop.f32.mrb[3].mxu1  ;;  %v712_v59 = vadd.f32 %v2484_v55, %v711_v37  ;;  %v782_v60 = vadd.f32 %v2485_v56, %v781_v38  ;;  %v2500_v55 = vld [vmem:[%s3529_s9 + $0x2] ss:$0 sm:$0xff] }
 0x241   : > { %v1435_v4 = vmul.f32 0.35355338, %v712_v59  ;;  %v1436_v5 = vmul.f32 0.35355338, %v782_v60  ;;  %v2501_v59 = vld [vmem:[%s3529_s9 + $0x3] ss:$0 sm:$0xff] }
 0x246   : > { %v895_v47 = vpop.f32.mrb[4].mxu0  ;;  %v965_v48 = vpop.f32.mrb[4].mxu1 }
 0x247   : > { %v896_v49 = vadd.f32 %v2490_v43, %v895_v47  ;;  %v966_v50 = vadd.f32 %v2491_v44, %v965_v48  ;;  %v2665_v51 = vpop.f32.mrb[5].mxu0  ;;  %v2676_v52 = vpop.f32.mrb[5].mxu1 }
 0x249   : > { %2744 = vmatpush3.xpose.msk.msra.mxu0 %vm1437_vm4, %v896_v49  ;;  %2749 = vmatpush3.xpose.msk.msra.mxu1 %vm1437_vm4, %v966_v50 }
 0x24a   : > { %2753 = vmatprep.subr.mxu0 %v3003_v20  ;;  %2758 = vmatprep.subr.mxu1 %v3003_v20 }
 0x24c   : > { %2746 = vmatmul.mubr.msk.f32.vlgmr.msra.gmra.mrb[12].mxu0 %vm1437_vm4, %v1433_v53  ;;  %2751 = vmatmul.mubr.msk.f32.vlgmr.msra.gmra.mrb[12].mxu1 %vm1437_vm4, %v1434_v54 }
 0x24d   : > { %2755 = vmatprep.mubr.msk.f32.mxu0 %vm3002_vm1, %v3003_v20  ;;  %2760 = vmatprep.mubr.msk.f32.mxu1 %vm3002_vm1, %v3003_v20 }
 0x24e   : > { %v1035_v61 = vpop.f32.mrb[6].mxu0  ;;  %v1105_v62 = vpop.f32.mrb[6].mxu1 }
 0x24f   : > { %v1036_v63 = vadd.f32 %v2492_v57, %v1035_v61  ;;  %v1106_v1 = vadd.f32 %v2493_v58, %v1105_v62  ;;  %v2687_v2 = vpop.f32.mrb[7].mxu0  ;;  %v2698_v3 = vpop.f32.mrb[7].mxu1 }
 0x251   : > { %2754 = vmatpush3.xpose.msk.msra.mxu0 %vm1437_vm4, %v1036_v63  ;;  %2759 = vmatpush3.xpose.msk.msra.mxu1 %vm1437_vm4, %v1106_v1 }
 0x252   : > { %2763 = vmatprep.subr.mxu0 %v3003_v20  ;;  %2768 = vmatprep.subr.mxu1 %v3003_v20 }
 0x254   : > { %2756 = vmatmul.mubr.msk.f32.vlgmr.msra.gmra.mrb[14].mxu0 %vm1437_vm4, %v1435_v4  ;;  %2761 = vmatmul.mubr.msk.f32.vlgmr.msra.gmra.mrb[14].mxu1 %vm1437_vm4, %v1436_v5  ;;  %v2078_v4 = vld [vmem:[%s3530_s10] sm:$0xff]  ;;  %v2079_v5 = vld [vmem:[%s3530_s10 + $0x8] sm:$0xff] }
 0x255   : > { %2765 = vmatprep.mubr.msk.f32.mxu0 %vm3002_vm1, %v3003_v20  ;;  %2770 = vmatprep.mubr.msk.f32.mxu1 %vm3002_vm1, %v3003_v20 }
 0x256   : > { %v1219_v8 = vpop.f32.mrb[8].mxu0  ;;  %v1289_v9 = vpop.f32.mrb[8].mxu1 }
 0x257   : > { %v1220_v10 = vadd.f32 %v2498_v6, %v1219_v8  ;;  %v1290_v11 = vadd.f32 %v2499_v7, %v1289_v9  ;;  %v2709_v13 = vpop.f32.mrb[9].mxu0  ;;  %v2720_v14 = vpop.f32.mrb[9].mxu1  ;;  %v2080_v6 = vld [vmem:[%s3530_s10 + $0x10] sm:$0xff]  ;;  %v2081_v9 = vld [vmem:[%s3530_s10 + $0x18] sm:$0xff] }
 0x259   : > { %2764 = vmatpush3.msra.mxu0 %v1220_v10  ;;  %2769 = vmatpush3.msra.mxu1 %v1290_v11 }
 0x25a   : > { %2773 = vmatprep.subr.mxu0 %v3003_v20  ;;  %2778 = vmatprep.subr.mxu1 %v3003_v20 }
 0x25e   : > { %v1359_v15 = vpop.f32.mrb[10].mxu0  ;;  %v3411_v16 = vpop.f32.mrb[10].mxu1 }
 0x25f   : > { %v2731_v17 = vpop.f32.mrb[11].mxu0  ;;  %v2742_v18 = vpop.f32.mrb[11].mxu1  ;;  %v1360_v58 = vadd.f32 %v2500_v55, %v1359_v15  ;;  %v1430_v62 = vadd.f32 %v2501_v59, %v3411_v16 }
 0x31f   : > { %v1510_v19 = vpop.f32.mrb[12].mxu0  ;;  %v1586_v21 = vpop.f32.mrb[12].mxu1 }
 0x320   : > { %v2747_v22 = vpop.f32.mrb[13].mxu0  ;;  %v2752_v23 = vpop.f32.mrb[13].mxu1  ;;  %v1742_v24 = vsel %vm1437_vm4, %v1510_v19, -inf  ;;  %v1745_v25 = vsel %vm1437_vm4, %v1586_v21, -inf }
 0x321   : > { %1743 = vmax.xlane.f32.xlu1 %v1742_v24 }
 0x325   : > { %1746 = vmax.xlane.f32.xlu1 %v1745_v25 }
 0x327   : > { %v1662_v26 = vpop.f32.mrb[14].mxu0  ;;  %v1738_v27 = vpop.f32.mrb[14].mxu1 }
 0x328   : > { %v2757_v28 = vpop.f32.mrb[15].mxu0  ;;  %v2762_v29 = vpop.f32.mrb[15].mxu1  ;;  %v1751_v30 = vsel %vm1437_vm4, %v1738_v27, -inf  ;;  %v1748_v31 = vsel %vm1437_vm4, %v1662_v26, -inf }
 0x329   : > { %1752 = vmax.xlane.f32.xlu1 %v1751_v30  ;;  %1749 = vmax.xlane.f32.xlu0 %v1748_v31 }
 0x3ae   : > { %v1744_v32 = vpop.xlane.xlu1 %1743 }
 0x3af   : > { %v1754_v33 = vsub.f32 %v1510_v19, %v1744_v32  ;;  %v2522_v32 = vld [vmem:[%s3531_s11] ss:$0 sm:$0xff] }
 0x3b1   : > { %v1758_v12 = vmul.f32 1.442695, %v1754_v33 }
 0x3b2   : > { %v1747_v34 = vpop.xlane.xlu1 %1746 }
 0x3b3   : > { %2921 = vpow2.f32 %v1758_v12  ;;  %v1755_v35 = vsub.f32 %v1586_v21, %v1747_v34 }
 0x3b5   : > { %v1760_v36 = vmul.f32 1.442695, %v1755_v35 }
 0x3b6   : > { %v1753_v37 = vpop.xlane.xlu1 %1752  ;;  %v1750_v38 = vpop.xlane.xlu0 %1749 }
 0x3b7   : > { %2923 = vpow2.f32 %v1760_v36  ;;  %v1757_v39 = vsub.f32 %v1738_v27, %v1753_v37  ;;  %v1756_v40 = vsub.f32 %v1662_v26, %v1750_v38 }
 0x3b9   : > { %v1764_v42 = vmul.f32 1.442695, %v1757_v39  ;;  %v1762_v41 = vmul.f32 1.442695, %v1756_v40 }
 0x3bb   : > { %2925 = vpow2.f32 %v1764_v42 }
 0x3bc   : > { %2927 = vpow2.f32 %v1762_v41 }
 0x3bd   : > { %v2922_v43 = vpop.eup %2921 }
 0x3be   : > { %v1766_v44 = vsel %vm1437_vm4, %v2922_v43, 0.0 }
 0x3bf   : > { %1767 = vadd.xlane.f32.xlu0 %v1766_v44 }
 0x3c1   : > { %v2924_v45 = vpop.eup %2923 }
 0x3c2   : > { %v1769_v46 = vsel %vm1437_vm4, %v2924_v45, 0.0 }
 0x3c3   : > { %1770 = vadd.xlane.f32.xlu1 %v1769_v46 }
 0x3c5   : > { %v2926_v47 = vpop.eup %2925 }
 0x3c6   : > { %v2928_v48 = vpop.eup %2927  ;;  %v1775_v49 = vsel %vm1437_vm4, %v2926_v47, 0.0 }
 0x3c7   : > { %1776 = vadd.xlane.f32.xlu1 %v1775_v49  ;;  %v1772_v50 = vsel %vm1437_vm4, %v2928_v48, 0.0 }
 0x3c8   : > { %1773 = vadd.xlane.f32.xlu0 %v1772_v50 }
 0x44c   : > { %v1768_v51 = vpop.xlane.xlu0 %1767 }
 0x44d   : > { %2929 = vrcp.f32 %v1768_v51 }
 0x450   : > { %v1771_v52 = vpop.xlane.xlu1 %1770 }
 0x451   : > { %2931 = vrcp.f32 %v1771_v52 }
 0x454   : > { %v1777_v53 = vpop.xlane.xlu1 %1776 }
 0x455   : > { %2933 = vrcp.f32 %v1777_v53  ;;  %v1774_v54 = vpop.xlane.xlu0 %1773 }
 0x456   : > { %2935 = vrcp.f32 %v1774_v54 }
 0x457   : > { %v2930_v56 = vpop.eup %2929 }
 0x458   : > { %v1782_v57 = vmul.f32 %v2930_v56, %v2922_v43 }
 0x45a   : > { %2766 = vmatmul.mubr.msk.f32.vlgmr.msra.gmra.mrb[16].mxu0 %vm1437_vm4, %v1782_v57 }
 0x45b   : > { %v2932_v60 = vpop.eup %2931  ;;  %2774 = vmatpush3.msra.mxu0 %v1360_v58  ;;  %2775 = vmatprep.mubr.msk.f32.mxu0 %vm3002_vm1, %v3003_v20 }
 0x45c   : > { %v1783_v61 = vmul.f32 %v2932_v60, %v2924_v45  ;;  %2783 = vmatprep.subr.mxu0 %v3003_v20 }
 0x45e   : > { %2771 = vmatmul.mubr.msk.f32.vlgmr.msra.gmra.mrb[16].mxu1 %vm1437_vm4, %v1783_v61 }
 0x45f   : > { %v2934_v63 = vpop.eup %2933  ;;  %2779 = vmatpush3.msra.mxu1 %v1430_v62  ;;  %2780 = vmatprep.mubr.msk.f32.mxu1 %vm3002_vm1, %v3003_v20 }
 0x460   : > { %v2936_v1 = vpop.eup %2935  ;;  %v1785_v2 = vmul.f32 %v2934_v63, %v2926_v47  ;;  %2788 = vmatprep.subr.mxu1 %v3003_v20 }
 0x461   : > { %v1784_v3 = vmul.f32 %v2936_v1, %v2928_v48 }
 0x462   : > { %2781 = vmatmul.mubr.msk.f32.vlgmr.msra.gmra.mrb[18].mxu1 %vm1437_vm4, %v1785_v2 }
 0x463   : > { %2776 = vmatmul.mubr.msk.f32.vlgmr.msra.gmra.mrb[18].mxu0 %vm1437_vm4, %v1784_v3  ;;  %2790 = vmatprep.mubr.msk.f32.mxu1 %vm3002_vm1, %v3003_v20 }
 0x464   : > { %2785 = vmatprep.mubr.msk.f32.mxu0 %vm3002_vm1, %v3003_v20  ;;  %2784 = vmatpush3.msra.mxu0 %v2078_v4 }
 0x465   : > { %2793 = vmatprep.subr.mxu0 %v3003_v20  ;;  %2789 = vmatpush3.msra.mxu1 %v2079_v5 }
 0x466   : > { %2798 = vmatprep.subr.mxu1 %v3003_v20 }
 0x52d   : > { %v1855_v7 = vpop.f32.mrb[16].mxu0 }
 0x52e   : > { %v2767_v8 = vpop.f32.mrb[17].mxu0  ;;  %2786 = vmatmul.mubr.msk.f32.vlgmr.msra.gmra.mrb[20].mxu0 %vm1437_vm4, %v1855_v7 }
 0x52f   : > { %2794 = vmatpush3.msra.mxu0 %v2080_v6  ;;  %2795 = vmatprep.mubr.msk.f32.mxu0 %vm3002_vm1, %v3003_v20 }
 0x531   : > { %v1928_v10 = vpop.f32.mrb[16].mxu1 }
 0x532   : > { %v2772_v11 = vpop.f32.mrb[17].mxu1  ;;  %2791 = vmatmul.mubr.msk.f32.vlgmr.msra.gmra.mrb[20].mxu1 %vm1437_vm4, %v1928_v10 }
 0x533   : > { %2799 = vmatpush3.msra.mxu1 %v2081_v9  ;;  %2800 = vmatprep.mubr.msk.f32.mxu1 %vm3002_vm1, %v3003_v20 }
 0x535   : > { %v2074_v13 = vpop.f32.mrb[18].mxu1 }
 0x536   : > { %v2001_v14 = vpop.f32.mrb[18].mxu0  ;;  %v2782_v15 = vpop.f32.mrb[19].mxu1  ;;  %2801 = vmatmul.mubr.msk.f32.vlgmr.msra.gmra.mrb[22].mxu1 %vm1437_vm4, %v2074_v13 }
 0x537   : > { %v2777_v16 = vpop.f32.mrb[19].mxu0  ;;  %2796 = vmatmul.mubr.msk.f32.vlgmr.msra.gmra.mrb[22].mxu0 %vm1437_vm4, %v2001_v14 }
 0x601   : > { %v2151_v17 = vpop.f32.mrb[20].mxu0 }
 0x602   : > { %v2787_v18 = vpop.f32.mrb[21].mxu0  ;;  %v2374_v21 = vsel %vm431_vm0, %v2151_v17, 0.0 }
 0x605   : > { %v2224_v19 = vpop.f32.mrb[20].mxu1 }
 0x606   : > { %v2375_v22 = vsel %vm431_vm0, %v2224_v19, 0.0  ;;  %v2792_v23 = vpop.f32.mrb[21].mxu1 }
 0x607   : > { %v2376_v24 = vadd.f32 %v2375_v22, %v2374_v21 }
 0x609   : > { %v2370_v20 = vpop.f32.mrb[22].mxu1 }
 0x60a   : > { %v2297_v25 = vpop.f32.mrb[22].mxu0  ;;  %v2802_v26 = vpop.f32.mrb[23].mxu1  ;;  %v2379_v30 = vsel %vm431_vm0, %v2370_v20, 0.0 }
 0x60b   : > { %v2377_v27 = vsel %vm431_vm0, %v2297_v25, 0.0  ;;  %v2797_v28 = vpop.f32.mrb[23].mxu0 }
 0x60c   : > { %v2378_v29 = vadd.f32 %v2377_v27, %v2376_v24 }
 0x60e   : > { %v2380_v31 = vadd.f32 %v2379_v30, %v2378_v29 }
 0x610   : > { %v2381_v33 = vadd.f32 %v2380_v31, %v3129_v0 }
 0x612   : > { %v2389_v12 = vadd.f32 %v2522_v32, %v2381_v33 }
 0x614   : > { %2390 = vst.msk [vmem:[%s419_s23] sm:$0xff] %vm431_vm0, %v2389_v12 }
 0x615   : > { %2950 = shalt.err (!%p2947_p3)
}
 0x616   : > { %s2951_s29 = scalar_lea.hbm %s3477_s16, 128  ;;  %s2955_s23 = scalar_lea.hbm %s3532_s12, 256 }
 0x617   : > { %p2952_p4 = scmp.ne.s32.totalorder %s3477_s16, %s2951_s29  ;;  %p2956_p9 = scmp.lt.u32.totalorder %s3477_s16, %s3532_s12 }
 0x618   : > { %p2957_p10 = scmp.lt.u32.totalorder %s2955_s23, %s2951_s29  ;;  %p2959_p12 = scmp.lt.u32.totalorder %s2951_s29, %s3477_s16 }
 0x619   : > { %p2953_p7 = pnand %p2952_p4, %p3114_p5 }
 0x61a   : > { %p2958_p11 = por %p2957_p10, %p2956_p9 }
 0x61b   : > { %p2954_p8 = pneg %p2953_p7 }
 0x61c   : > { %p2960_p13 = por %p2959_p12, %p2958_p11 }
 0x61e   : > { %p2961_p0 = pnand %p2960_p13, %p2954_p8 }
 0x620   : > { %2964 = shalt.err (!%p2961_p0)
}
 0x621   : > { %2875 = dma.vmem_to_hbm [thread:$0]  (%p3114_p5), %s3479_s1, 128, %s3477_s16, %s2392_s17  }
 0x622 PF: > { %p2881_p1 = scmp.ge.s32.totalorder %s2999_s27, 2  ;;  %s2417_s18 = sand.u32 1, %s2987_s24  }
 0x623   : > { %s2418_s0 = scalar_lea.sflag [#allocation5], %s2417_s18 }
 0x624   : > { %p2878_p2 = pnand %p2881_p1, %p3118_p6 }
 0x626   : > { %2982 = dma.done.wait (!%p2878_p2), %s2418_s0, 128  }
 0x627   : > { %2984 = vsyncadd (!%p2878_p2), %s2418_s0, 4294967168  ;;  %p24_p3 = scmp.ge.s32.totalorder %s3101_s28, 4   ;;  %s3535_s24 = smov %s2991_s25 }
 0x628   : > { %s3536_s25 = smov %s2995_s26  ;;  %s3537_s26 = smov %s3112_s13 }
 0x629   : > { %s3538_s27 = smov %s3101_s28  ;;  %26 = sbr.rel (!%p24_p3) target bundleno = 6 (0x6), region = 106 }
 0x630   :  { %2423 = vsyncpa [#allocation5], 1 }
 0x631   :  { %2425 = vsyncpa [#allocation5 + $0x1], 1 }

</bundles_post_ra>
